<compile_context>
chip_gen: v7x
topology: tpu7x:2x2x1
jax: 0.10.0
libtpu: 0.0.40
codegen_flags: <defaults>
</compile_context>

<pallas_src>
import functools

import jax
import jax.numpy as jnp
from jax.experimental import pallas as pl
from jax.experimental.pallas import tpu as pltpu


# ----------------------------------------------------------------------------
# Pallas kernel
# ----------------------------------------------------------------------------
def _convT_stats_kernel(p_ref, w_ref, o_ref, sum_ref, ssq_ref):
    """One conv column-tile of the transposed formulation:
         yT (Cout, tm) = w_flatT (Cout, K) @ patchesT (K, tm)
       plus per-tile BatchNorm partial statistics accumulated in f32."""
    y = jnp.dot(w_ref[...], p_ref[...], preferred_element_type=jnp.float32)
    o_ref[...] = y.astype(o_ref.dtype)                 # lane-dense (Cout, tm)
    s = jnp.sum(y, axis=1, keepdims=True)              # (Cout, 1)
    q = jnp.sum(y * y, axis=1, keepdims=True)          # (Cout, 1)
    # Replicated across 128 lanes so the stats block is lane-aligned; the
    # wrapper divides the global reduction by 128.
    sum_ref[...] = jnp.broadcast_to(s, sum_ref.shape)
    ssq_ref[...] = jnp.broadcast_to(q, ssq_ref.shape)


# ----------------------------------------------------------------------------
# Tiling / VMEM helpers (all trace-time Python on static shapes)
# ----------------------------------------------------------------------------
def _round_up(x, m):
    return (x + m - 1) // m * m


def _vmem_budget():
    """Per-generation scoped-VMEM budget: half of physical capacity, capped
    at 64 MiB (=> 64 MiB on v5e/v6e with 128 MiB VMEM, 32 MiB on v7x)."""
    cap = 0
    try:
        info = pltpu.get_tpu_info()
        cap = int(getattr(info, "vmem_capacity_bytes", 0) or 0)
    except Exception:
        cap = 0
    if cap <= 0:
        cap = 64 * 1024 * 1024        # conservative fallback
    return max(16 * 1024 * 1024, min(cap // 2, 64 * 1024 * 1024))


def _sublane(itemsize):
    # f32 sublane tile = 8, bf16 = 16 (packed), int8/fp8 = 32.
    return 32 // itemsize


def _conv_tile_cols(Mp, K, Cout, in_itemsize, out_itemsize, budget):
    """Largest multiple-of-128 column tile tm that fits the padded-footprint
    VMEM budget, preferring an even number (>=2) of grid steps."""
    kp = _round_up(K, _sublane(in_itemsize))              # sublane-padded K
    cout_p = _round_up(Cout, 8)
    # Double-buffered per-lane bytes: patches block + conv-output block.
    per_col = 2 * kp * in_itemsize + 2 * cout_p * out_itemsize
    # Grid-invariant weights (padded) + the two small stats blocks.
    fixed = (2 * _round_up(Cout, _sublane(in_itemsize)) * _round_up(K, 128)
             * in_itemsize) + 2 * 2 * cout_p * 128 * 4
    usable = int(budget * 0.75) - fixed
    max_tm = max(128, (usable // max(per_col, 1)) // 128 * 128)

    start = max(128, min(Mp, max_tm) // 128 * 128)
    cands = range(start, 127, -128)
    for tm in cands:                                   # even #steps, >= 2
        if Mp % tm == 0 and (Mp // tm) >= 2 and (Mp // tm) % 2 == 0:
            return tm
    for tm in cands:                                   # >= 2 steps
        if Mp % tm == 0 and (Mp // tm) >= 2:
            return tm
    for tm in cands:                                   # anything that divides
        if Mp % tm == 0:
            return tm
    return min(Mp, start)                              # 128 always divides Mp


# ----------------------------------------------------------------------------
# Pallas wrapper
# ----------------------------------------------------------------------------
def convT_matmul_stats(patches_t, w_t):
    """patches_t: (K=27*Cin, Mp), w_t: (Cout, K)
       -> yT (Cout, Mp) f32, per-tile sums/ssqs (Cout, T*128) f32."""
    K, Mp = patches_t.shape
    Cout = w_t.shape[0]
    budget = _vmem_budget()
    tm = _conv_tile_cols(Mp, K, Cout, patches_t.dtype.itemsize, 4, budget)
    T = Mp // tm

    yT, sums, ssqs = pl.pallas_call(
        _convT_stats_kernel,
        out_shape=(
            jax.ShapeDtypeStruct((Cout, Mp), jnp.float32),
            jax.ShapeDtypeStruct((Cout, T * 128), jnp.float32),
            jax.ShapeDtypeStruct((Cout, T * 128), jnp.float32),
        ),
        grid_spec=pltpu.PrefetchScalarGridSpec(
            num_scalar_prefetch=0,
            grid=(T,),
            in_specs=[
                # Lane-dense patch column tile.
                pl.BlockSpec((K, tm), lambda i: (0, i)),
                # Full-extent, grid-invariant weight block: DMA'd once.
                pl.BlockSpec((Cout, K), lambda i: (0, 0)),
            ],
            out_specs=[
                pl.BlockSpec((Cout, tm), lambda i: (0, i)),
                pl.BlockSpec((Cout, 128), lambda i: (0, i)),
                pl.BlockSpec((Cout, 128), lambda i: (0, i)),
            ],
        ),
        compiler_params=pltpu.CompilerParams(
            dimension_semantics=("parallel",),
            vmem_limit_bytes=budget),
    )(patches_t, w_t)
    return yT, sums, ssqs


# ----------------------------------------------------------------------------
# Glue: transposed im2col tap extraction + BN/LReLU epilogue (plain JAX; XLA
# fuses the epilogue into the next layer's pad/tap-stack)
# ----------------------------------------------------------------------------
def _extract_patches_t(x_ncdhw, stride, dtype):
    """k=3, pad=1 Conv3d patches, transposed to (27*C, M).  Cast to `dtype`
    *before* the tap stack so the materialized 27x tensor is that dtype."""
    N, C, D, H, W = x_ncdhw.shape
    sd, sh, sw = stride
    Do = (D - 1) // sd + 1
    Ho = (H - 1) // sh + 1
    Wo = (W - 1) // sw + 1
    x = x_ncdhw.astype(dtype)
    xp = jnp.pad(x, ((0, 0), (0, 0), (1, 1), (1, 1), (1, 1)))
    taps = []
    for kd in range(3):
        for kh in range(3):
            for kw in range(3):
                sl = xp[:, :,
                        kd:kd + sd * (Do - 1) + 1:sd,
                        kh:kh + sh * (Ho - 1) + 1:sh,
                        kw:kw + sw * (Wo - 1) + 1:sw]      # (N, C, Do, Ho, Wo)
                taps.append(sl)
    p = jnp.stack(taps, axis=0)                            # (27, N, C, Do, Ho, Wo)
    p = jnp.transpose(p, (0, 2, 1, 3, 4, 5))               # (27, C, N, Do, Ho, Wo)
    return p.reshape(27 * C, N * Do * Ho * Wo), (N, Do, Ho, Wo)


def conv3d_bn_lrelu(x_ncdhw, weight, gamma, beta, stride, *, eps=1e-5,
                    use_bf16=True, act_dtype=jnp.float32):
    """Conv3d(k=3, p=1, stride) + BatchNorm3d (training-mode batch stats)
    + LeakyReLU(0.01).  The Conv3d bias is omitted: with training-mode BN it
    is exactly cancelled by the mean subtraction."""
    in_dtype = jnp.bfloat16 if use_bf16 else jnp.float32
    patches_t, (N, Do, Ho, Wo) = _extract_patches_t(x_ncdhw, stride, in_dtype)
    Cout, Cin = weight.shape[0], weight.shape[1]
    # (Cout, Cin, kd, kh, kw) -> (Cout, 27*Cin); tap ordering = (kd, kh, kw, Cin).
    w_t = jnp.transpose(weight, (0, 2, 3, 4, 1)).reshape(Cout, 27 * Cin)
    w_t = w_t.astype(in_dtype)

    # Pad the output-position axis with zero columns to a multiple of 256 so
    # tiles are lane-aligned and an even grid length exists (zeros contribute
    # nothing to the BN sums; mean/var use the real M below).
    M = N * Do * Ho * Wo
    Mp = _round_up(M, 256)
    if Mp != M:
        patches_t = jnp.pad(patches_t, ((0, 0), (0, Mp - M)))

    yT, sums, ssqs = convT_matmul_stats(patches_t, w_t)
    yT = yT[:, :M]

    # Finish BN batch statistics from the per-tile partials (tiny (Cout,) math;
    # each tile's sum was replicated across 128 lanes).
    # NOTE: E[x^2]-mean^2 in f32 can cancel for very large M; acceptable here.
    denom = 128.0 * M
    mean = jnp.sum(sums, axis=1) / denom
    ex2 = jnp.sum(ssqs, axis=1) / denom
    var = jnp.maximum(ex2 - mean * mean, 0.0)          # biased batch variance
    scale = gamma / jnp.sqrt(var + eps)
    shift = beta - mean * scale

    # Per-channel affine + LeakyReLU as plain jnp: fuses into the next layer's
    # pad / tap-stack (no separate Pallas round trip through HBM).
    z = yT * scale[:, None] + shift[:, None]
    z = jnp.where(z >= 0, z, jnp.float32(0.01) * z).astype(act_dtype)
    z = z.reshape(Cout, N, Do, Ho, Wo)
    return jnp.transpose(z, (1, 0, 2, 3, 4))           # back to NCDHW


def down_forward(x, params, reduce_depth=False, use_bf16=True):
    """Down(in, out, reduce_depth) == DoubleConv_s2 forward."""
    stride1 = (2, 2, 2) if reduce_depth else (1, 2, 2)
    mid_dtype = jnp.bfloat16 if use_bf16 else jnp.float32
    h = conv3d_bn_lrelu(x, params["w1"], params["g1"], params["be1"], stride1,
                        use_bf16=use_bf16, act_dtype=mid_dtype)
    h = conv3d_bn_lrelu(h, params["w2"], params["g2"], params["be2"], (1, 1, 1),
                        use_bf16=use_bf16, act_dtype=jnp.float32)
    return h


def init_params(key, in_channels, out_channels):
    ks = jax.random.split(key, 8)

    def conv_w(k, co, ci):
        bound = 1.0 / jnp.sqrt(ci * 27.0)
        return jax.random.uniform(k, (co, ci, 3, 3, 3), jnp.float32, -bound, bound)

    def conv_b(k, co, ci):
        bound = 1.0 / jnp.sqrt(ci * 27.0)
        return jax.random.uniform(k, (co,), jnp.float32, -bound, bound)

    # b1/b2 kept for parameter-structure parity with the PyTorch module but
    # unused: the conv bias is exactly cancelled by training-mode BatchNorm.
    return {
        "w1": conv_w(ks[0], out_channels, in_channels),
        "b1": conv_b(ks[1], out_channels, in_channels),
        "g1": 1.0 + 0.1 * jax.random.normal(ks[2], (out_channels,), jnp.float32),
        "be1": 0.1 * jax.random.normal(ks[3], (out_channels,), jnp.float32),
        "w2": conv_w(ks[4], out_channels, out_channels),
        "b2": conv_b(ks[5], out_channels, out_channels),
        "g2": 1.0 + 0.1 * jax.random.normal(ks[6], (out_channels,), jnp.float32),
        "be2": 0.1 * jax.random.normal(ks[7], (out_channels,), jnp.float32),
    }


if __name__ == "__main__":
    key = jax.random.PRNGKey(0)
    k_x, k_p = jax.random.split(key)

    # Small NCDHW input: batch=2, in_channels=4, depth=4, H=W=16.
    N, Cin, Cout, D, H, W = 2, 4, 8, 4, 16, 16
    x = jax.random.normal(k_x, (N, Cin, D, H, W), jnp.float32)
    params = init_params(k_p, Cin, Cout)

    # use_bf16=True: bf16 patch tensor / MXU operands / inter-layer activation
    # (f32 accumulation + f32 BN stats); recommended on v5e/v6e/v7x.
    fwd = jax.jit(functools.partial(down_forward, reduce_depth=False,
                                    use_bf16=True))
    out = jax.block_until_ready(fwd(x, params))

    # stride (1,2,2) halves H and W: expected (2, 8, 4, 8, 8)
    assert out.shape == (N, Cout, D, H // 2, W // 2), out.shape
    assert bool(jnp.all(jnp.isfinite(out)))
    print("KERNEL_OK")
</pallas_src>

<mosaic_0001>
module attributes {stable_mosaic.version = 11 : i64} {
  func.func @_convT_stats_kernel(%arg0: i32, %arg1: memref<108x256xbf16, #tpu.memory_space<vmem>>, %arg2: memref<8x108xbf16, #tpu.memory_space<vmem>>, %arg3: memref<8x256xf32, #tpu.memory_space<vmem>>, %arg4: memref<8x128xf32, #tpu.memory_space<vmem>>, %arg5: memref<8x128xf32, #tpu.memory_space<vmem>>) attributes {dimension_semantics = [#tpu.dimension_semantics<parallel>], iteration_bounds = array<i64: 2>, scalar_prefetch = 0 : i64, scratch_operands = 0 : i64, tpu.core_type = #tpu.core_type<tc>, window_params = [{transform_indices = @transform_0, window_bounds = array<i64: 108, 256>}, {pipeline_mode = #tpu.pipeline_mode<synchronous>, transform_indices = @transform_1, window_bounds = array<i64: 8, 108>}, {transform_indices = @transform_2, window_bounds = array<i64: 8, 256>}, {transform_indices = @transform_3, window_bounds = array<i64: 8, 128>}, {transform_indices = @transform_4, window_bounds = array<i64: 8, 128>}]} {
    %c0 = arith.constant 0 : index
    %c0_0 = arith.constant 0 : index
    %0 = vector.load %arg2[%c0, %c0_0] : memref<8x108xbf16, #tpu.memory_space<vmem>>, vector<8x108xbf16>
    %c0_1 = arith.constant 0 : index
    %c0_2 = arith.constant 0 : index
    %1 = vector.load %arg1[%c0_1, %c0_2] : memref<108x256xbf16, #tpu.memory_space<vmem>>, vector<108x256xbf16>
    %cst = arith.constant dense<0.000000e+00> : vector<8x256xf32>
    %2 = tpu.matmul %0, %1, %cst {dimension_numbers = #tpu.dot_dimension_numbers<[1], [0], [0], [1], [0, 0, 1, 1], [], []>} : vector<8x108xbf16>, vector<108x256xbf16>, vector<8x256xf32> -> vector<8x256xf32>
    %c0_3 = arith.constant 0 : index
    %c0_4 = arith.constant 0 : index
    %3 = vector.load %arg3[%c0_3, %c0_4] : memref<8x256xf32, #tpu.memory_space<vmem>>, vector<8x256xf32>
    tpu.vector_store %arg3[%c0_3, %c0_4], %2 {strides = array<i32>} : memref<8x256xf32, #tpu.memory_space<vmem>>, vector<8x256xf32>,
    %cst_5 = arith.constant dense<0.000000e+00> : vector<8xf32>
    %4 = vector.multi_reduction <add>, %2, %cst_5 [1] : vector<8x256xf32> to vector<8xf32>
    %5 = vector.shape_cast %4 : vector<8xf32> to vector<8x1xf32>
    %6 = arith.mulf %2, %2 : vector<8x256xf32>
    %cst_6 = arith.constant dense<0.000000e+00> : vector<8xf32>
    %7 = vector.multi_reduction <add>, %6, %cst_6 [1] : vector<8x256xf32> to vector<8xf32>
    %8 = vector.shape_cast %7 : vector<8xf32> to vector<8x1xf32>
    %9 = vector.shape_cast %5 : vector<8x1xf32> to vector<8x1xf32>
    %10 = vector.broadcast %9 : vector<8x1xf32> to vector<8x128xf32>
    %c0_7 = arith.constant 0 : index
    %c0_8 = arith.constant 0 : index
    %11 = vector.load %arg4[%c0_7, %c0_8] : memref<8x128xf32, #tpu.memory_space<vmem>>, vector<8x128xf32>
    tpu.vector_store %arg4[%c0_7, %c0_8], %10 {strides = array<i32>} : memref<8x128xf32, #tpu.memory_space<vmem>>, vector<8x128xf32>,
    %12 = vector.shape_cast %8 : vector<8x1xf32> to vector<8x1xf32>
    %13 = vector.broadcast %12 : vector<8x1xf32> to vector<8x128xf32>
    %c0_9 = arith.constant 0 : index
    %c0_10 = arith.constant 0 : index
    %14 = vector.load %arg5[%c0_9, %c0_10] : memref<8x128xf32, #tpu.memory_space<vmem>>, vector<8x128xf32>
    tpu.vector_store %arg5[%c0_9, %c0_10], %13 {strides = array<i32>} : memref<8x128xf32, #tpu.memory_space<vmem>>, vector<8x128xf32>,
    return
  }
  func.func @transform_0(%arg0: i32) -> (i32, i32) {
    %c0_i32 = arith.constant 0 : i32
    %c0_i32_0 = arith.constant 0 : i32
    return %c0_i32, %arg0 : i32, i32
  }
  func.func @transform_1(%arg0: i32) -> (i32, i32) {
    %c0_i32 = arith.constant 0 : i32
    %c0_i32_0 = arith.constant 0 : i32
    %c0_i32_1 = arith.constant 0 : i32
    return %c0_i32, %c0_i32_0 : i32, i32
  }
  func.func @transform_2(%arg0: i32) -> (i32, i32) {
    %c0_i32 = arith.constant 0 : i32
    %c0_i32_0 = arith.constant 0 : i32
    return %c0_i32, %arg0 : i32, i32
  }
  func.func @transform_3(%arg0: i32) -> (i32, i32) {
    %c0_i32 = arith.constant 0 : i32
    %c0_i32_0 = arith.constant 0 : i32
    return %c0_i32, %arg0 : i32, i32
  }
  func.func @transform_4(%arg0: i32) -> (i32, i32) {
    %c0_i32 = arith.constant 0 : i32
    %c0_i32_0 = arith.constant 0 : i32
    return %c0_i32, %arg0 : i32, i32
  }
}

module attributes {stable_mosaic.version = 11 : i64} {
  func.func @_convT_stats_kernel(%arg0: i32, %arg1: memref<216x256xbf16, #tpu.memory_space<vmem>>, %arg2: memref<8x216xbf16, #tpu.memory_space<vmem>>, %arg3: memref<8x256xf32, #tpu.memory_space<vmem>>, %arg4: memref<8x128xf32, #tpu.memory_space<vmem>>, %arg5: memref<8x128xf32, #tpu.memory_space<vmem>>) attributes {dimension_semantics = [#tpu.dimension_semantics<parallel>], iteration_bounds = array<i64: 2>, scalar_prefetch = 0 : i64, scratch_operands = 0 : i64, tpu.core_type = #tpu.core_type<tc>, window_params = [{transform_indices = @transform_0, window_bounds = array<i64: 216, 256>}, {pipeline_mode = #tpu.pipeline_mode<synchronous>, transform_indices = @transform_1, window_bounds = array<i64: 8, 216>}, {transform_indices = @transform_2, window_bounds = array<i64: 8, 256>}, {transform_indices = @transform_3, window_bounds = array<i64: 8, 128>}, {transform_indices = @transform_4, window_bounds = array<i64: 8, 128>}]} {
    %c0 = arith.constant 0 : index
    %c0_0 = arith.constant 0 : index
    %0 = vector.load %arg2[%c0, %c0_0] : memref<8x216xbf16, #tpu.memory_space<vmem>>, vector<8x216xbf16>
    %c0_1 = arith.constant 0 : index
    %c0_2 = arith.constant 0 : index
    %1 = vector.load %arg1[%c0_1, %c0_2] : memref<216x256xbf16, #tpu.memory_space<vmem>>, vector<216x256xbf16>
    %cst = arith.constant dense<0.000000e+00> : vector<8x256xf32>
    %2 = tpu.matmul %0, %1, %cst {dimension_numbers = #tpu.dot_dimension_numbers<[1], [0], [0], [1], [0, 0, 1, 1], [], []>} : vector<8x216xbf16>, vector<216x256xbf16>, vector<8x256xf32> -> vector<8x256xf32>
    %c0_3 = arith.constant 0 : index
    %c0_4 = arith.constant 0 : index
    %3 = vector.load %arg3[%c0_3, %c0_4] : memref<8x256xf32, #tpu.memory_space<vmem>>, vector<8x256xf32>
    tpu.vector_store %arg3[%c0_3, %c0_4], %2 {strides = array<i32>} : memref<8x256xf32, #tpu.memory_space<vmem>>, vector<8x256xf32>,
    %cst_5 = arith.constant dense<0.000000e+00> : vector<8xf32>
    %4 = vector.multi_reduction <add>, %2, %cst_5 [1] : vector<8x256xf32> to vector<8xf32>
    %5 = vector.shape_cast %4 : vector<8xf32> to vector<8x1xf32>
    %6 = arith.mulf %2, %2 : vector<8x256xf32>
    %cst_6 = arith.constant dense<0.000000e+00> : vector<8xf32>
    %7 = vector.multi_reduction <add>, %6, %cst_6 [1] : vector<8x256xf32> to vector<8xf32>
    %8 = vector.shape_cast %7 : vector<8xf32> to vector<8x1xf32>
    %9 = vector.shape_cast %5 : vector<8x1xf32> to vector<8x1xf32>
    %10 = vector.broadcast %9 : vector<8x1xf32> to vector<8x128xf32>
    %c0_7 = arith.constant 0 : index
    %c0_8 = arith.constant 0 : index
    %11 = vector.load %arg4[%c0_7, %c0_8] : memref<8x128xf32, #tpu.memory_space<vmem>>, vector<8x128xf32>
    tpu.vector_store %arg4[%c0_7, %c0_8], %10 {strides = array<i32>} : memref<8x128xf32, #tpu.memory_space<vmem>>, vector<8x128xf32>,
    %12 = vector.shape_cast %8 : vector<8x1xf32> to vector<8x1xf32>
    %13 = vector.broadcast %12 : vector<8x1xf32> to vector<8x128xf32>
    %c0_9 = arith.constant 0 : index
    %c0_10 = arith.constant 0 : index
    %14 = vector.load %arg5[%c0_9, %c0_10] : memref<8x128xf32, #tpu.memory_space<vmem>>, vector<8x128xf32>
    tpu.vector_store %arg5[%c0_9, %c0_10], %13 {strides = array<i32>} : memref<8x128xf32, #tpu.memory_space<vmem>>, vector<8x128xf32>,
    return
  }
  func.func @transform_0(%arg0: i32) -> (i32, i32) {
    %c0_i32 = arith.constant 0 : i32
    %c0_i32_0 = arith.constant 0 : i32
    return %c0_i32, %arg0 : i32, i32
  }
  func.func @transform_1(%arg0: i32) -> (i32, i32) {
    %c0_i32 = arith.constant 0 : i32
    %c0_i32_0 = arith.constant 0 : i32
    %c0_i32_1 = arith.constant 0 : i32
    return %c0_i32, %c0_i32_0 : i32, i32
  }
  func.func @transform_2(%arg0: i32) -> (i32, i32) {
    %c0_i32 = arith.constant 0 : i32
    %c0_i32_0 = arith.constant 0 : i32
    return %c0_i32, %arg0 : i32, i32
  }
  func.func @transform_3(%arg0: i32) -> (i32, i32) {
    %c0_i32 = arith.constant 0 : i32
    %c0_i32_0 = arith.constant 0 : i32
    return %c0_i32, %arg0 : i32, i32
  }
  func.func @transform_4(%arg0: i32) -> (i32, i32) {
    %c0_i32 = arith.constant 0 : i32
    %c0_i32_0 = arith.constant 0 : i32
    return %c0_i32, %arg0 : i32, i32
  }
}

</mosaic_0001>

<bundles_post_ra>
// kernel: down_forward.2
= control target key start
LH: loop header
LB: loop body
LE: loop exit
PB: predicated region body
PF: predicated region fallthrough
CT: control target
= control target key end

     0   :  { %s708_s15 = smov 0   ;;  %s710_s16 = smov 0   ;;  %s772_s0 = inlined_call_operand.vmem [shape: bf16[108,512], index: 0, kind: input, shape index: {}]   ;;  %s773_s1 = inlined_call_operand.vmem [shape: bf16[8,108], index: 1, kind: input, shape index: {}]   ;;  %s774_s2 = inlined_call_operand.vmem [shape: f32[8,512], index: 2, kind: output, shape index: {0}]   ;;  %s775_s3 = inlined_call_operand.vmem [shape: f32[8,256], index: 3, kind: output, shape index: {1}]   ;;  %s776_s4 = inlined_call_operand.vmem [shape: f32[8,256], index: 4, kind: output, shape index: {2}]  }
   0x1   :  { %s712_s17 = smov 0  }
   0x2 LB: > { %s724_s18 = sadd.s32 4294967295, %s680_s17   ;;  %s727_s19 = sadd.s32 1, %s680_s17   ;;  %s680_s17 = sphi %s712_s17, %s779_s17   ;;  %s676_s16 = sphi %s710_s16, %s778_s16   ;;  %s672_s15 = sphi %s708_s15, %s777_s15  }
   0x3   : > { %s19_s20 = ssub.s32 %s680_s17, %s727_s19  ;;  %s22_s21 = sadd.s32 1, %s676_s16 }
   0x4   : > { %p20_p0 = scmp.eq.s32.totalorder %s19_s20, 0  ;;  %p29_p1 = scmp.ne.s32.totalorder %s676_s16, %s672_s15 }
   0x5   : > { %p30_p2 = scmp.eq.s32.totalorder %s680_s17, 0  ;;  %p583_p4 = scmp.ge.s32.totalorder %s680_s17, 2 }
   0x6   : > { %s736_s22 = scalar_select %p20_p0, %s676_s16, %s22_s21  }
   0x7   : > { %p31_p3 = por %p30_p2, %p29_p1  ;;  %157 = sbr.rel (%p583_p4) target bundleno = 25 (0x19), region = 20 }
   0xe   : > { %160 = sbr.rel (!%p31_p3) target bundleno = 25 (0x19), region = 24  ;;  %s162_s23 = sand.u32 (%p31_p3), 1, %s676_s16  }
   0xf   : > { %s609_s24 = sshll.u32 (%p31_p3), %s680_s17, 3  ;;  %s610_s25 = smul.u32 (%p31_p3), 112, %s162_s23 }
  0x10   : > { %s167_s28 = scalar_lea.vmem (%p31_p3), %s772_s0, %s609_s24 }
  0x11   : > { %v221_v0 = vld [vmem:[%s167_s28] sm:$0xff] (%p31_p3)  ;;  %v223_v1 = vld [vmem:[%s167_s28 + $0x10] sm:$0xff] (%p31_p3)  ;;  %s164_s29 = scalar_lea.vmem (%p31_p3), [#allocation2], %s610_s25 }
  0x12   : > { %v225_v2 = vld [vmem:[%s167_s28 + $0x20] sm:$0xff] (%p31_p3)  ;;  %v227_v3 = vld [vmem:[%s167_s28 + $0x30] sm:$0xff] (%p31_p3)  ;;  %222 = vst [vmem:[%s164_s29] sm:$0xff] (%p31_p3), %v221_v0  ;;  %224 = vst [vmem:[%s164_s29 + $0x8] sm:$0xff] (%p31_p3), %v223_v1 }
  0x13   : > { %v229_v4 = vld [vmem:[%s167_s28 + $0x40] sm:$0xff] (%p31_p3)  ;;  %v231_v5 = vld [vmem:[%s167_s28 + $0x50] sm:$0xff] (%p31_p3)  ;;  %226 = vst [vmem:[%s164_s29 + $0x10] sm:$0xff] (%p31_p3), %v225_v2  ;;  %228 = vst [vmem:[%s164_s29 + $0x18] sm:$0xff] (%p31_p3), %v227_v3 }
  0x14   : > { %230 = vst [vmem:[%s164_s29 + $0x20] sm:$0xff] (%p31_p3), %v229_v4  ;;  %232 = vst [vmem:[%s164_s29 + $0x28] sm:$0xff] (%p31_p3), %v231_v5  ;;  %v233_v6 = vld [vmem:[%s167_s28 + $0x60] sm:$0xff] (%p31_p3)  ;;  %v235_v7 = vld [vmem:[%s167_s28 + $0x70] sm:$0xff] (%p31_p3) }
  0x15   : > { %v237_v8 = vld [vmem:[%s167_s28 + $0x80] sm:$0xff]  ;;  %234 = vst [vmem:[%s164_s29 + $0x30] sm:$0xff] %v233_v6  ;;  %236 = vst [vmem:[%s164_s29 + $0x38] sm:$0xff] %v235_v7  ;;  %v239_v9 = vld [vmem:[%s167_s28 + $0x90] sm:$0xff] }
  0x16   : > { %238 = vst [vmem:[%s164_s29 + $0x40] sm:$0xff] %v237_v8  ;;  %v241_v10 = vld [vmem:[%s167_s28 + $0xa0] sm:$0xff]  ;;  %v243_v11 = vld [vmem:[%s167_s28 + $0xb0] sm:$0xff]  ;;  %240 = vst [vmem:[%s164_s29 + $0x48] sm:$0xff] %v239_v9 }
  0x17   : > { %242 = vst [vmem:[%s164_s29 + $0x50] sm:$0xff] %v241_v10  ;;  %244 = vst [vmem:[%s164_s29 + $0x58] sm:$0xff] %v243_v11  ;;  %v245_v12 = vld [vmem:[%s167_s28 + $0xc0] sm:$0xff]  ;;  %v247_v13 = vld [vmem:[%s167_s28 + $0xd0] sm:$0xff] }
  0x18   : > { %246 = vst [vmem:[%s164_s29 + $0x60] sm:$0xff] %v245_v12  ;;  %248 = vst [vmem:[%s164_s29 + $0x68] sm:$0xff] %v247_v13 }
  0x19 PF: > { %p586_p5 = scmp.ge.s32.totalorder %s680_s17, 1  ;;  %p253_p6 = scmp.lt.s32.totalorder %s680_s17, 3 }
  0x1b   : > { %p254_p7 = pnand %p586_p5, %p253_p6 }
  0x1c   : > { %s260_s30 = sand.u32 (!%p254_p7), 1, %s672_s15   ;;  %v682_v14 = vmov (!%p254_p7), 0   ;;  %vm396_vm0 = vcmask (!%p254_p7), 1045504   ;;  %v309_v30 = vld [vmem:[%s773_s1] sm:$0xf] (!%p254_p7)  ;;  %vm392_vm1 = vcmask (!%p254_p7), 883712  }
  0x1d   : > { %257 = sbr.rel (%p254_p7) target bundleno = 424 (0x1a8), region = 62  ;;  %435 = vmatprep.mubr.bf16.mxu0 (!%p254_p7), %v682_v14  ;;  %s587_s9 = sshll.u32 (!%p254_p7), %s724_s18, 1 }
  0x1e   : > { %s611_s5 = smul.u32 (!%p254_p7), 112, %s260_s30  ;;  %p295_p8 = scmp.lt.s32.totalorder (!%p254_p7), %s587_s9, 3 }
  0x1f   : > { %p300_p9 = scmp.lt.s32.totalorder (!%p254_p7), %s724_s18, 1 }
  0x20   : > { %s262_s6 = scalar_lea.vmem (!%p254_p7), [#allocation2], %s611_s5 }
  0x21   : > { %v637_v15 = vld [vmem:[%s262_s6 + $0x4] ss:$8 sps:$4 sm:$0xff] (!%p254_p7)   ;;  %v639_v16 = vld [vmem:[%s262_s6] ss:$8 sps:$4 sm:$0xff] (!%p254_p7)   ;;  %v640_v17 = vld [vmem:[%s262_s6 + $0x14] ss:$8 sps:$4 sm:$0xff] (!%p254_p7)  }
  0x22   : > { %403 = vmatprep.subr.bf16.mxu0 (!%p254_p7), %v637_v15  ;;  %v642_v18 = vld [vmem:[%s262_s6 + $0x10] ss:$8 sps:$4 sm:$0xff] (!%p254_p7)   ;;  %v643_v19 = vld [vmem:[%s262_s6 + $0x24] ss:$8 sps:$4 sm:$0xff] (!%p254_p7)   ;;  %v645_v20 = vld [vmem:[%s262_s6 + $0x20] ss:$8 sps:$4 sm:$0xff] (!%p254_p7)  }
  0x23   : > { %404 = vmatpush1.bf16.msra.mxu0 (!%p254_p7), %v639_v16  ;;  %v646_v21 = vld [vmem:[%s262_s6 + $0x34] ss:$8 sps:$4 sm:$0xff] (!%p254_p7)   ;;  %v648_v22 = vld [vmem:[%s262_s6 + $0x30] ss:$8 sps:$4 sm:$0xff] (!%p254_p7)   ;;  %v649_v23 = vld [vmem:[%s262_s6 + $0x44] ss:$8 sps:$4 sm:$0xff] (!%p254_p7)  }
  0x24   : > { %405 = vmatprep.subr.bf16.mxu0 %v640_v17  ;;  %v651_v24 = vld [vmem:[%s262_s6 + $0x40] ss:$8 sps:$4 sm:$0xff]   ;;  %v652_v25 = vld [vmem:[%s262_s6 + $0x54] ss:$8 sps:$4 sm:$0xff]   ;;  %v654_v26 = vld [vmem:[%s262_s6 + $0x50] ss:$8 sps:$4 sm:$0xff]  }
  0x25   : > { %v655_v27 = vld [vmem:[%s262_s6 + $0x64] ss:$8 sps:$4 sm:$0x3f]   ;;  %v657_v28 = vld [vmem:[%s262_s6 + $0x60] ss:$8 sps:$4 sm:$0x3f]  }
  0x26   : > { %v398_v29 = vsel %vm396_vm0, %v657_v28, 0  ;;  %s781_s9 = smov (!%p295_p8, %s587_s9), 3  ;;  %s783_s18 = smov (!%p300_p9, %s724_s18), 1 }
  0x27   : > { %406 = vmatpush1.bf16.msra.mxu0 %v642_v18  ;;  %s588_s10 = sshll.u32 %s781_s9, 3  ;;  %s589_s14 = sshll.u32 %s783_s18, 3 }
  0x28   : > { %407 = vmatprep.subr.bf16.mxu0 %v643_v19  ;;  %s298_s13 = scalar_lea.vmem %s774_s2, %s588_s10  ;;  %s303_s20 = scalar_lea.vmem %s775_s3, %s589_s14 }
  0x29   : > { %s307_s24 = scalar_lea.vmem %s776_s4, %s589_s14 }
  0x2b   : > { %408 = vmatpush1.bf16.msra.mxu0 %v645_v20 }
  0x2c   : > { %409 = vmatprep.subr.bf16.mxu0 %v646_v21 }
  0x2f   : > { %410 = vmatpush1.bf16.msra.mxu0 %v648_v22 }
  0x30   : > { %411 = vmatprep.subr.bf16.mxu0 %v649_v23 }
  0x33   : > { %412 = vmatpush1.bf16.msra.mxu0 %v651_v24 }
  0x34   : > { %413 = vmatprep.subr.bf16.mxu0 %v652_v25 }
  0x37   : > { %414 = vmatpush1.bf16.msra.mxu0 %v654_v26 }
  0x38   : > { %605 = vmatprep.subr.msk.bf16.mxu0 %vm396_vm0, %v655_v27 }
  0x3b   : > { %416 = vmatpush1.bf16.msra.mxu0 %v398_v29 }
  0x3e   : > { %606 = vmatmul.mubr.msk.bf16.vlgmr.msra.gmra.mrb[0].mxu0 %vm392_vm1, %v309_v30 }
 0x111   : > { %v437_v31 = vpop.f32.mrb[0].mxu0 }
 0x112   : > { %444 = vst [vmem:[%s298_s13] sm:$0xff] %v437_v31  ;;  %v439_v32 = vpop.f32.mrb[1].mxu0  ;;  %v449_v33 = vmul.f32 %v437_v31, %v437_v31 }
 0x113   : > { %445 = vst [vmem:[%s298_s13 + $0x8] sm:$0xff] %v439_v32  ;;  %v441_v34 = vpop.f32.mrb[2].mxu0  ;;  %v446_v35 = vadd.f32 %v439_v32, %v437_v31  ;;  %v450_v36 = vmul.f32 %v439_v32, %v439_v32 }
 0x114   : > { %v442_v37 = vpop.f32.mrb[3].mxu0 }
 0x115   : > { %447 = vadd.xlane.f32.xlu0 %v446_v35  ;;  %v451_v38 = vadd.f32 %v450_v36, %v449_v33 }
 0x119   : > { %452 = vadd.xlane.f32.xlu0 %v451_v38 }
 0x1a2   : > { %v448_v39 = vpop.xlane.xlu0 %447 }
 0x1a3   : > { %454 = vst [vmem:[%s303_s20] sm:$0xff] %v448_v39 }
 0x1a6   : > { %v453_v40 = vpop.xlane.xlu0 %452 }
 0x1a7   : > { %455 = vst [vmem:[%s307_s24] sm:$0xff] %v453_v40 }
 0x1a8 PF: > { %p12_p10 = scmp.ge.s32.totalorder %s727_s19, 4   ;;  %s777_s15 = smov %s676_s16 }
 0x1a9   : > { %s778_s16 = smov %s736_s22  ;;  %s779_s17 = smov %s727_s19 }
 0x1aa   :  { %14 = sbr.rel (!%p12_p10) target bundleno = 2 (0x2), region = 125 }

// kernel: down_forward.3
= control target key start
LH: loop header
LB: loop body
LE: loop exit
PB: predicated region body
PF: predicated region fallthrough
CT: control target
= control target key end

     0   :  { %s882_s15 = smov 0   ;;  %s884_s16 = smov 0   ;;  %s1039_s0 = inlined_call_operand.vmem [shape: bf16[216,512], index: 0, kind: input, shape index: {}]   ;;  %s1040_s1 = inlined_call_operand.vmem [shape: bf16[8,216], index: 1, kind: input, shape index: {}]   ;;  %s1041_s2 = inlined_call_operand.vmem [shape: f32[8,512], index: 2, kind: output, shape index: {0}]   ;;  %s1042_s3 = inlined_call_operand.vmem [shape: f32[8,256], index: 3, kind: output, shape index: {1}]   ;;  %s1043_s4 = inlined_call_operand.vmem [shape: f32[8,256], index: 4, kind: output, shape index: {2}]  }
   0x1   :  { %s886_s17 = smov 0  }
   0x2 LB: > { %s898_s18 = sadd.s32 4294967295, %s855_s17   ;;  %s901_s19 = sadd.s32 1, %s855_s17   ;;  %s855_s17 = sphi %s886_s17, %s1046_s17   ;;  %s851_s16 = sphi %s884_s16, %s1045_s16   ;;  %s847_s15 = sphi %s882_s15, %s1044_s15  }
   0x3   : > { %s19_s20 = ssub.s32 %s855_s17, %s901_s19  ;;  %s22_s21 = sadd.s32 1, %s851_s16 }
   0x4   : > { %p20_p0 = scmp.eq.s32.totalorder %s19_s20, 0  ;;  %p29_p1 = scmp.ne.s32.totalorder %s851_s16, %s847_s15 }
   0x5   : > { %p30_p2 = scmp.eq.s32.totalorder %s855_s17, 0  ;;  %p721_p4 = scmp.ge.s32.totalorder %s855_s17, 2 }
   0x6   : > { %s910_s22 = scalar_select %p20_p0, %s851_s16, %s22_s21  }
   0x7   : > { %p31_p3 = por %p30_p2, %p29_p1  ;;  %157 = sbr.rel (%p721_p4) target bundleno = 32 (0x20), region = 20 }
   0xe   : > { %160 = sbr.rel (!%p31_p3) target bundleno = 32 (0x20), region = 24  ;;  %s162_s23 = sand.u32 (%p31_p3), 1, %s851_s16  }
   0xf   : > { %s763_s24 = sshll.u32 (%p31_p3), %s855_s17, 3  ;;  %s764_s25 = smul.u32 (%p31_p3), 216, %s162_s23 }
  0x10   : > { %s918_s28 = scalar_lea.vmem (%p31_p3), %s1039_s0, %s763_s24 }
  0x11   : > { %v247_v0 = vld [vmem:[%s918_s28] sm:$0xff] (%p31_p3)  ;;  %v249_v1 = vld [vmem:[%s918_s28 + $0x10] sm:$0xff] (%p31_p3)  ;;  %s926_s29 = scalar_lea.vmem (%p31_p3), [#allocation2], %s764_s25 }
  0x12   : > { %v251_v2 = vld [vmem:[%s918_s28 + $0x20] sm:$0xff] (%p31_p3)  ;;  %v253_v3 = vld [vmem:[%s918_s28 + $0x30] sm:$0xff] (%p31_p3)  ;;  %248 = vst [vmem:[%s926_s29] sm:$0xff] (%p31_p3), %v247_v0  ;;  %250 = vst [vmem:[%s926_s29 + $0x8] sm:$0xff] (%p31_p3), %v249_v1 }
  0x13   : > { %v255_v4 = vld [vmem:[%s918_s28 + $0x40] sm:$0xff] (%p31_p3)  ;;  %v257_v5 = vld [vmem:[%s918_s28 + $0x50] sm:$0xff] (%p31_p3)  ;;  %252 = vst [vmem:[%s926_s29 + $0x10] sm:$0xff] (%p31_p3), %v251_v2  ;;  %254 = vst [vmem:[%s926_s29 + $0x18] sm:$0xff] (%p31_p3), %v253_v3 }
  0x14   : > { %256 = vst [vmem:[%s926_s29 + $0x20] sm:$0xff] (%p31_p3), %v255_v4  ;;  %258 = vst [vmem:[%s926_s29 + $0x28] sm:$0xff] (%p31_p3), %v257_v5  ;;  %v259_v6 = vld [vmem:[%s918_s28 + $0x60] sm:$0xff] (%p31_p3)  ;;  %v261_v7 = vld [vmem:[%s918_s28 + $0x70] sm:$0xff] (%p31_p3) }
  0x15   : > { %v263_v8 = vld [vmem:[%s918_s28 + $0x80] sm:$0xff]  ;;  %260 = vst [vmem:[%s926_s29 + $0x30] sm:$0xff] %v259_v6  ;;  %262 = vst [vmem:[%s926_s29 + $0x38] sm:$0xff] %v261_v7  ;;  %v265_v9 = vld [vmem:[%s918_s28 + $0x90] sm:$0xff] }
  0x16   : > { %264 = vst [vmem:[%s926_s29 + $0x40] sm:$0xff] %v263_v8  ;;  %v267_v10 = vld [vmem:[%s918_s28 + $0xa0] sm:$0xff]  ;;  %v269_v11 = vld [vmem:[%s918_s28 + $0xb0] sm:$0xff]  ;;  %266 = vst [vmem:[%s926_s29 + $0x48] sm:$0xff] %v265_v9 }
  0x17   : > { %268 = vst [vmem:[%s926_s29 + $0x50] sm:$0xff] %v267_v10  ;;  %270 = vst [vmem:[%s926_s29 + $0x58] sm:$0xff] %v269_v11  ;;  %v271_v12 = vld [vmem:[%s918_s28 + $0xc0] sm:$0xff]  ;;  %v273_v13 = vld [vmem:[%s918_s28 + $0xd0] sm:$0xff] }
  0x18   : > { %v275_v14 = vld [vmem:[%s918_s28 + $0xe0] sm:$0xff]  ;;  %272 = vst [vmem:[%s926_s29 + $0x60] sm:$0xff] %v271_v12  ;;  %274 = vst [vmem:[%s926_s29 + $0x68] sm:$0xff] %v273_v13  ;;  %v277_v15 = vld [vmem:[%s918_s28 + $0xf0] sm:$0xff] }
  0x19   : > { %276 = vst [vmem:[%s926_s29 + $0x70] sm:$0xff] %v275_v14  ;;  %v279_v16 = vld [vmem:[%s918_s28 + $0x100] sm:$0xff]  ;;  %v281_v17 = vld [vmem:[%s918_s28 + $0x110] sm:$0xff]  ;;  %278 = vst [vmem:[%s926_s29 + $0x78] sm:$0xff] %v277_v15 }
  0x1a   : > { %280 = vst [vmem:[%s926_s29 + $0x80] sm:$0xff] %v279_v16  ;;  %282 = vst [vmem:[%s926_s29 + $0x88] sm:$0xff] %v281_v17  ;;  %v283_v18 = vld [vmem:[%s918_s28 + $0x120] sm:$0xff]  ;;  %v285_v19 = vld [vmem:[%s918_s28 + $0x130] sm:$0xff] }
  0x1b   : > { %v287_v20 = vld [vmem:[%s918_s28 + $0x140] sm:$0xff]  ;;  %284 = vst [vmem:[%s926_s29 + $0x90] sm:$0xff] %v283_v18  ;;  %286 = vst [vmem:[%s926_s29 + $0x98] sm:$0xff] %v285_v19  ;;  %v289_v21 = vld [vmem:[%s918_s28 + $0x150] sm:$0xff] }
  0x1c   : > { %288 = vst [vmem:[%s926_s29 + $0xa0] sm:$0xff] %v287_v20  ;;  %v291_v22 = vld [vmem:[%s918_s28 + $0x160] sm:$0xff]  ;;  %v293_v23 = vld [vmem:[%s918_s28 + $0x170] sm:$0xff]  ;;  %290 = vst [vmem:[%s926_s29 + $0xa8] sm:$0xff] %v289_v21 }
  0x1d   : > { %292 = vst [vmem:[%s926_s29 + $0xb0] sm:$0xff] %v291_v22  ;;  %294 = vst [vmem:[%s926_s29 + $0xb8] sm:$0xff] %v293_v23  ;;  %v295_v24 = vld [vmem:[%s918_s28 + $0x180] sm:$0xff]  ;;  %v297_v25 = vld [vmem:[%s918_s28 + $0x190] sm:$0xff] }
  0x1e   : > { %v299_v26 = vld [vmem:[%s918_s28 + $0x1a0] sm:$0xff]  ;;  %296 = vst [vmem:[%s926_s29 + $0xc0] sm:$0xff] %v295_v24  ;;  %298 = vst [vmem:[%s926_s29 + $0xc8] sm:$0xff] %v297_v25 }
  0x1f   : > { %300 = vst [vmem:[%s926_s29 + $0xd0] sm:$0xff] %v299_v26 }
  0x20 PF: > { %p724_p5 = scmp.ge.s32.totalorder %s855_s17, 1  ;;  %p305_p6 = scmp.lt.s32.totalorder %s855_s17, 3 }
  0x22   : > { %p306_p7 = pnand %p724_p5, %p305_p6 }
  0x23   : > { %s312_s30 = sand.u32 (!%p306_p7), 1, %s847_s15   ;;  %v982_v27 = vld [vmem:[%s1040_s1] sm:$0xff] (!%p306_p7)  ;;  %vm530_vm0 = vcmask (!%p306_p7), 719872   ;;  %vm534_vm1 = vcmask (!%p306_p7), 1043456   ;;  %s725_s9 = sshll.u32 (!%p306_p7), %s898_s18, 1 }
  0x24   : > { %309 = sbr.rel (%p306_p7) target bundleno = 459 (0x1cb), region = 62  ;;  %v730_v28 = vcombine.high (!%p306_p7), %v982_v27, %v982_v27  ;;  %v729_v59 = vcombine.low (!%p306_p7), %v982_v27, %v982_v27  ;;  %p347_p8 = scmp.lt.s32.totalorder (!%p306_p7), %s725_s9, 3 }
  0x25   : > { %s765_s7 = smul.u32 (!%p306_p7), 216, %s312_s30  ;;  %p352_p9 = scmp.lt.s32.totalorder (!%p306_p7), %s898_s18, 1 }
  0x26   : > { %760 = vmatprep.mubr.msk.bf16.mxu0 (!%p306_p7), %vm530_vm0, %v730_v28 }
  0x27   : > { %s986_s8 = scalar_lea.vmem (!%p306_p7), [#allocation2], %s765_s7 }
  0x28   : > { %v790_v29 = vld [vmem:[%s986_s8 + $0x4] ss:$8 sps:$4 sm:$0xff] (!%p306_p7)   ;;  %v792_v30 = vld [vmem:[%s986_s8] ss:$8 sps:$4 sm:$0xff] (!%p306_p7)   ;;  %v793_v31 = vld [vmem:[%s986_s8 + $0x14] ss:$8 sps:$4 sm:$0xff] (!%p306_p7)  }
  0x29   : > { %541 = vmatprep.subr.bf16.mxu0 (!%p306_p7), %v790_v29  ;;  %v795_v32 = vld [vmem:[%s986_s8 + $0x10] ss:$8 sps:$4 sm:$0xff] (!%p306_p7)   ;;  %v796_v33 = vld [vmem:[%s986_s8 + $0x24] ss:$8 sps:$4 sm:$0xff] (!%p306_p7)   ;;  %v798_v34 = vld [vmem:[%s986_s8 + $0x20] ss:$8 sps:$4 sm:$0xff] (!%p306_p7)  }
  0x2a   : > { %542 = vmatpush1.bf16.msra.mxu0 (!%p306_p7), %v792_v30  ;;  %v799_v35 = vld [vmem:[%s986_s8 + $0x34] ss:$8 sps:$4 sm:$0xff] (!%p306_p7)   ;;  %v801_v36 = vld [vmem:[%s986_s8 + $0x30] ss:$8 sps:$4 sm:$0xff] (!%p306_p7)   ;;  %v802_v37 = vld [vmem:[%s986_s8 + $0x44] ss:$8 sps:$4 sm:$0xff] (!%p306_p7)  }
  0x2b   : > { %543 = vmatprep.subr.bf16.mxu0 %v793_v31  ;;  %v804_v38 = vld [vmem:[%s986_s8 + $0x40] ss:$8 sps:$4 sm:$0xff]   ;;  %v805_v39 = vld [vmem:[%s986_s8 + $0x54] ss:$8 sps:$4 sm:$0xff]   ;;  %v807_v40 = vld [vmem:[%s986_s8 + $0x50] ss:$8 sps:$4 sm:$0xff]  }
  0x2c   : > { %v808_v41 = vld [vmem:[%s986_s8 + $0x64] ss:$8 sps:$4 sm:$0xff]   ;;  %v810_v42 = vld [vmem:[%s986_s8 + $0x60] ss:$8 sps:$4 sm:$0xff]   ;;  %v811_v43 = vld [vmem:[%s986_s8 + $0x74] ss:$8 sps:$4 sm:$0xff]  }
  0x2d   : > { %v813_v44 = vld [vmem:[%s986_s8 + $0x70] ss:$8 sps:$4 sm:$0xff]   ;;  %v814_v45 = vld [vmem:[%s986_s8 + $0x84] ss:$8 sps:$4 sm:$0xff]   ;;  %v816_v46 = vld [vmem:[%s986_s8 + $0x80] ss:$8 sps:$4 sm:$0xff]  }
  0x2e   : > { %544 = vmatpush1.bf16.msra.mxu0 %v795_v32  ;;  %v817_v47 = vld [vmem:[%s986_s8 + $0x94] ss:$8 sps:$4 sm:$0xff]   ;;  %v819_v48 = vld [vmem:[%s986_s8 + $0x90] ss:$8 sps:$4 sm:$0xff]   ;;  %v820_v49 = vld [vmem:[%s986_s8 + $0xa4] ss:$8 sps:$4 sm:$0xff]  }
  0x2f   : > { %545 = vmatprep.subr.bf16.mxu0 %v796_v33  ;;  %v822_v50 = vld [vmem:[%s986_s8 + $0xa0] ss:$8 sps:$4 sm:$0xff]   ;;  %v823_v51 = vld [vmem:[%s986_s8 + $0xb4] ss:$8 sps:$4 sm:$0xff]   ;;  %v825_v52 = vld [vmem:[%s986_s8 + $0xb0] ss:$8 sps:$4 sm:$0xff]  }
  0x30   : > { %v826_v53 = vld [vmem:[%s986_s8 + $0xc4] ss:$8 sps:$4 sm:$0xff]   ;;  %v388_v54 = vld [vmem:[%s986_s8 + $0xd0] sm:$0xff]  ;;  %v828_v55 = vld [vmem:[%s986_s8 + $0xc0] ss:$8 sps:$4 sm:$0xff]   ;;  %s1048_s9 = smov (!%p347_p8, %s725_s9), 3 }
  0x31   : > { %v758_v56 = vcombine.high %v388_v54, %v388_v54  ;;  %v757_v57 = vcombine.low %v388_v54, %v388_v54  ;;  %s726_s10 = sshll.u32 %s1048_s9, 3  ;;  %s1050_s18 = smov (!%p352_p9, %s898_s18), 1 }
  0x32   : > { %546 = vmatpush1.bf16.msra.mxu0 %v798_v34  ;;  %s350_s13 = scalar_lea.vmem %s1041_s2, %s726_s10  ;;  %s727_s14 = sshll.u32 %s1050_s18, 3 }
  0x33   : > { %547 = vmatprep.subr.bf16.mxu0 %v799_v35  ;;  %v536_v58 = vsel %vm534_vm1, %v757_v57, 0  ;;  %s355_s20 = scalar_lea.vmem %s1042_s3, %s727_s14  ;;  %s359_s24 = scalar_lea.vmem %s1043_s4, %s727_s14 }
  0x36   : > { %548 = vmatpush1.bf16.msra.mxu0 %v801_v36 }
  0x37   : > { %549 = vmatprep.subr.bf16.mxu0 %v802_v37 }
  0x3a   : > { %550 = vmatpush1.bf16.msra.mxu0 %v804_v38 }
  0x3b   : > { %551 = vmatprep.subr.bf16.mxu0 %v805_v39 }
  0x3e   : > { %552 = vmatpush1.bf16.msra.mxu0 %v807_v40 }
  0x3f   : > { %553 = vmatprep.subr.bf16.mxu0 %v808_v41 }
  0x42   : > { %554 = vmatpush1.bf16.msra.mxu0 %v810_v42 }
  0x43   : > { %555 = vmatprep.subr.bf16.mxu0 %v811_v43 }
  0x46   : > { %556 = vmatpush1.bf16.msra.mxu0 %v813_v44 }
  0x47   : > { %557 = vmatprep.subr.bf16.mxu0 %v814_v45 }
  0x4a   : > { %558 = vmatpush1.bf16.msra.mxu0 %v816_v46 }
  0x4b   : > { %559 = vmatprep.subr.bf16.mxu0 %v817_v47 }
  0x4e   : > { %560 = vmatpush1.bf16.msra.mxu0 %v819_v48 }
  0x4f   : > { %561 = vmatprep.subr.bf16.mxu0 %v820_v49 }
  0x52   : > { %562 = vmatpush1.bf16.msra.mxu0 %v822_v50 }
  0x53   : > { %563 = vmatprep.subr.bf16.mxu0 %v823_v51 }
  0x56   : > { %564 = vmatpush1.bf16.msra.mxu0 %v825_v52 }
  0x57   : > { %565 = vmatprep.subr.bf16.mxu0 %v826_v53 }
  0x5a   : > { %566 = vmatpush1.bf16.msra.mxu0 %v828_v55 }
  0x5b   : > { %759 = vmatprep.subr.msk.bf16.mxu0 %vm534_vm1, %v758_v56 }
  0x5e   : > { %568 = vmatpush1.bf16.msra.mxu0 %v536_v58 }
  0x61   : > { %574 = vmatmul.mubr.bf16.vlgmr.msra.gmra.mrb[0].mxu0 %v729_v59 }
 0x134   : > { %v575_v60 = vpop.f32.mrb[0].mxu0 }
 0x135   : > { %582 = vst [vmem:[%s350_s13] sm:$0xff] %v575_v60  ;;  %v577_v61 = vpop.f32.mrb[1].mxu0  ;;  %v587_v62 = vmul.f32 %v575_v60, %v575_v60 }
 0x136   : > { %583 = vst [vmem:[%s350_s13 + $0x8] sm:$0xff] %v577_v61  ;;  %v579_v63 = vpop.f32.mrb[2].mxu0  ;;  %v584_v0 = vadd.f32 %v577_v61, %v575_v60  ;;  %v588_v1 = vmul.f32 %v577_v61, %v577_v61 }
 0x137   : > { %v580_v2 = vpop.f32.mrb[3].mxu0 }
 0x138   : > { %585 = vadd.xlane.f32.xlu0 %v584_v0  ;;  %v589_v3 = vadd.f32 %v588_v1, %v587_v62 }
 0x13c   : > { %590 = vadd.xlane.f32.xlu0 %v589_v3 }
 0x1c5   : > { %v586_v4 = vpop.xlane.xlu0 %585 }
 0x1c6   : > { %592 = vst [vmem:[%s355_s20] sm:$0xff] %v586_v4 }
 0x1c9   : > { %v591_v5 = vpop.xlane.xlu0 %590 }
 0x1ca   : > { %593 = vst [vmem:[%s359_s24] sm:$0xff] %v591_v5 }
 0x1cb PF: > { %p12_p10 = scmp.ge.s32.totalorder %s901_s19, 4   ;;  %s1044_s15 = smov %s851_s16 }
 0x1cc   : > { %s1045_s16 = smov %s910_s22  ;;  %s1046_s17 = smov %s901_s19 }
 0x1cd   :  { %14 = sbr.rel (!%p12_p10) target bundleno = 2 (0x2), region = 125 }

</bundles_post_ra>
